<compile_context>
chip_gen: v5e
topology: v5e:2x2
jax: 0.10.0
libtpu: 0.0.40
codegen_flags: <defaults>
</compile_context>

<pallas_src>
import functools
import math

import jax
import jax.numpy as jnp
from jax import lax
from jax.experimental import pallas as pl
from jax.experimental.pallas import tpu as pltpu


# ---------------------------------------------------------------------------
# Fused MHA kernel: one grid step == one batch element
# ---------------------------------------------------------------------------

def _mha_fused_kernel(x_ref, wqkv_ref, bqkv_ref, wout_ref, bout_ref, o_ref,
                      *, n_heads):
    # x_ref: (1, S, D)   wqkv: (D, 3D)  bqkv: (1, 3D)
    # wout:  (D, D)      bout: (1, D)   o_ref: (1, S, D)
    S, D = x_ref.shape[1], x_ref.shape[2]
    Hd = D // n_heads

    x = x_ref[0].astype(jnp.float32)                               # (S, D)

    # QKV projection (weights resident in VMEM across the whole grid).
    qkv = jnp.dot(x, wqkv_ref[...].astype(jnp.float32),
                  preferred_element_type=jnp.float32)              # (S, 3D)
    qkv = qkv + bqkv_ref[...].astype(jnp.float32)

    # Per-head attention + fused out-projection via row-slices of W_out.
    out = jnp.zeros((S, D), jnp.float32)
    for h in range(n_heads):                                       # static unroll
        q = qkv[:, h * Hd:(h + 1) * Hd]                            # (S, Hd)
        k = qkv[:, D + h * Hd:D + (h + 1) * Hd]                    # (S, Hd)
        v = qkv[:, 2 * D + h * Hd:2 * D + (h + 1) * Hd]            # (S, Hd)

        # scores = q @ k^T without materializing a transposed copy.
        s = lax.dot_general(q, k, (((1,), (1,)), ((), ())),
                            preferred_element_type=jnp.float32)    # (S, S)

        # Numerically-stable softmax in f32 (no scaling: matches reference).
        m = jnp.max(s, axis=-1, keepdims=True)
        p = jnp.exp(s - m)
        denom = jnp.sum(p, axis=-1, keepdims=True)
        p = p * pl.reciprocal(denom, approx=True)                  # EUP slot

        o_h = jnp.dot(p, v, preferred_element_type=jnp.float32)    # (S, Hd)

        # concat-heads @ W_out  ==  Σ_h  o_h @ W_out[h*Hd:(h+1)*Hd, :]
        w_rows = wout_ref[h * Hd:(h + 1) * Hd, :].astype(jnp.float32)
        out = out + jnp.dot(o_h, w_rows, preferred_element_type=jnp.float32)

    out = out + bout_ref[...].astype(jnp.float32)
    o_ref[0] = out.astype(o_ref.dtype)


# ---------------------------------------------------------------------------
# Module wrapper
# ---------------------------------------------------------------------------

def init_mha_params(key, model_dim, dtype=jnp.float32):
    """Deterministic init matching nn.Linear shapes (weights stored as (in, out))."""
    k1, k2, k3, k4 = jax.random.split(key, 4)
    bound = 1.0 / math.sqrt(model_dim)
    return {
        "w_qkv": jax.random.uniform(k1, (model_dim, 3 * model_dim), dtype,
                                    -bound, bound),
        "b_qkv": jax.random.uniform(k2, (3 * model_dim,), dtype, -bound, bound),
        "w_out": jax.random.uniform(k3, (model_dim, model_dim), dtype,
                                    -bound, bound),
        "b_out": jax.random.uniform(k4, (model_dim,), dtype, -bound, bound),
    }


def multi_head_attention(x, params, n_heads):
    """x: (batch, num_crops, model_dim) -> (out, None), out same shape as x."""
    B, S, D = x.shape                        # S == num_crops
    assert D % n_heads == 0

    kernel = functools.partial(_mha_fused_kernel, n_heads=n_heads)
    out = pl.pallas_call(
        kernel,
        out_shape=jax.ShapeDtypeStruct((B, S, D), x.dtype),
        grid=(B,),
        in_specs=[
            pl.BlockSpec((1, S, D), lambda b: (b, 0, 0)),       # x (per batch)
            pl.BlockSpec((D, 3 * D), lambda b: (0, 0)),         # W_qkv (resident)
            pl.BlockSpec((1, 3 * D), lambda b: (0, 0)),         # b_qkv (resident)
            pl.BlockSpec((D, D), lambda b: (0, 0)),             # W_out (resident)
            pl.BlockSpec((1, D), lambda b: (0, 0)),             # b_out (resident)
        ],
        out_specs=pl.BlockSpec((1, S, D), lambda b: (b, 0, 0)),
        compiler_params=pltpu.CompilerParams(
            dimension_semantics=("parallel",)),                 # megacore on v7x
    )(x,
      params["w_qkv"], params["b_qkv"].reshape(1, 3 * D),
      params["w_out"], params["b_out"].reshape(1, D))
    return out, None


# ---------------------------------------------------------------------------
# Pure-JAX reference (same math, no Pallas) for a sanity check
# ---------------------------------------------------------------------------

def _reference(x, params, n_heads):
    B, S, D = x.shape
    Hd = D // n_heads
    x_sb = jnp.transpose(x, (1, 0, 2))                     # (S, B, D)
    qkv = x_sb @ params["w_qkv"] + params["b_qkv"]
    q, k, v = jnp.split(qkv, 3, axis=-1)
    to_h = lambda t: jnp.transpose(t.reshape(S, B * n_heads, Hd), (1, 0, 2))
    qh, kh, vh = to_h(q), to_h(k), to_h(v)
    s = jnp.einsum("bqd,bkd->bqk", qh, kh)                 # no scaling
    p = jax.nn.softmax(s, axis=-1)
    o = jnp.einsum("bqk,bkd->bqd", p, vh)
    o = jnp.transpose(o, (1, 0, 2)).reshape(S, B, D)
    o = o @ params["w_out"] + params["b_out"]
    return jnp.transpose(o, (1, 0, 2))


if __name__ == "__main__":
    key = jax.random.PRNGKey(0)
    kx, kp = jax.random.split(key)

    batch, num_crops, model_dim, n_heads = 2, 8, 32, 4
    x = jax.random.normal(kx, (batch, num_crops, model_dim), jnp.float32)
    params = init_mha_params(kp, model_dim)

    out, attn = multi_head_attention(x, params, n_heads)
    out = jax.block_until_ready(out)

    ref = _reference(x, params, n_heads)
    assert out.shape == (batch, num_crops, model_dim)
    assert attn is None
    # tolerance relaxed slightly for pl.reciprocal(approx=True) in the softmax
    assert jnp.allclose(out, ref, atol=5e-3, rtol=5e-3), "mismatch vs reference"

    print("KERNEL_OK")
</pallas_src>

<mosaic_0001>
module attributes {stable_mosaic.version = 11 : i64} {
  func.func @_mha_fused_kernel(%arg0: i32, %arg1: memref<1x8x32xf32, #tpu.memory_space<vmem>>, %arg2: memref<32x96xf32, #tpu.memory_space<vmem>>, %arg3: memref<1x96xf32, #tpu.memory_space<vmem>>, %arg4: memref<32x32xf32, #tpu.memory_space<vmem>>, %arg5: memref<1x32xf32, #tpu.memory_space<vmem>>, %arg6: memref<1x8x32xf32, #tpu.memory_space<vmem>>) attributes {dimension_semantics = [#tpu.dimension_semantics<parallel>], iteration_bounds = array<i64: 2>, scalar_prefetch = 0 : i64, scratch_operands = 0 : i64, tpu.core_type = #tpu.core_type<tc>, window_params = [{transform_indices = @transform_0, window_bounds = array<i64: 1, 8, 32>}, {pipeline_mode = #tpu.pipeline_mode<synchronous>, transform_indices = @transform_1, window_bounds = array<i64: 32, 96>}, {pipeline_mode = #tpu.pipeline_mode<synchronous>, transform_indices = @transform_2, window_bounds = array<i64: 1, 96>}, {pipeline_mode = #tpu.pipeline_mode<synchronous>, transform_indices = @transform_3, window_bounds = array<i64: 32, 32>}, {pipeline_mode = #tpu.pipeline_mode<synchronous>, transform_indices = @transform_4, window_bounds = array<i64: 1, 32>}, {transform_indices = @transform_5, window_bounds = array<i64: 1, 8, 32>}]} {
    %c0 = arith.constant 0 : index
    %c0_0 = arith.constant 0 : index
    %c0_1 = arith.constant 0 : index
    %0 = vector.load %arg1[%c0, %c0_0, %c0_1] : memref<1x8x32xf32, #tpu.memory_space<vmem>>, vector<1x8x32xf32>
    %1 = vector.shape_cast %0 : vector<1x8x32xf32> to vector<8x32xf32>
    %c0_2 = arith.constant 0 : index
    %c0_3 = arith.constant 0 : index
    %2 = vector.load %arg2[%c0_2, %c0_3] : memref<32x96xf32, #tpu.memory_space<vmem>>, vector<32x96xf32>
    %cst = arith.constant dense<0.000000e+00> : vector<8x96xf32>
    %3 = tpu.matmul %1, %2, %cst {dimension_numbers = #tpu.dot_dimension_numbers<[1], [0], [0], [1], [0, 0, 1, 1], [], []>} : vector<8x32xf32>, vector<32x96xf32>, vector<8x96xf32> -> vector<8x96xf32>
    %c0_4 = arith.constant 0 : index
    %c0_5 = arith.constant 0 : index
    %4 = vector.load %arg3[%c0_4, %c0_5] : memref<1x96xf32, #tpu.memory_space<vmem>>, vector<1x96xf32>
    %5 = vector.broadcast %4 : vector<1x96xf32> to vector<8x96xf32>
    %6 = arith.addf %3, %5 : vector<8x96xf32>
    %cst_6 = arith.constant 0.000000e+00 : f32
    %7 = vector.broadcast %cst_6 : f32 to vector<8x32xf32>
    %8 = vector.extract_strided_slice %6 {offsets = [0, 0], sizes = [8, 8], strides = [1, 1]} : vector<8x96xf32> to vector<8x8xf32>
    %9 = vector.extract_strided_slice %6 {offsets = [0, 32], sizes = [8, 8], strides = [1, 1]} : vector<8x96xf32> to vector<8x8xf32>
    %10 = vector.extract_strided_slice %6 {offsets = [0, 64], sizes = [8, 8], strides = [1, 1]} : vector<8x96xf32> to vector<8x8xf32>
    %cst_7 = arith.constant dense<0.000000e+00> : vector<8x8xf32>
    %11 = tpu.matmul %8, %9, %cst_7 {dimension_numbers = #tpu.dot_dimension_numbers<[1], [1], [0], [0], [0, 0, 1, 0], [], []>} : vector<8x8xf32>, vector<8x8xf32>, vector<8x8xf32> -> vector<8x8xf32>
    %cst_8 = arith.constant dense<0xFF800000> : vector<8xf32>
    %12 = vector.multi_reduction <maximumf>, %11, %cst_8 [1] : vector<8x8xf32> to vector<8xf32>
    %13 = vector.shape_cast %12 : vector<8xf32> to vector<8x1xf32>
    %14 = vector.broadcast %13 : vector<8x1xf32> to vector<8x8xf32>
    %15 = arith.subf %11, %14 : vector<8x8xf32>
    %16 = math.exp %15 : vector<8x8xf32>
    %cst_9 = arith.constant dense<0.000000e+00> : vector<8xf32>
    %17 = vector.multi_reduction <add>, %16, %cst_9 [1] : vector<8x8xf32> to vector<8xf32>
    %18 = vector.shape_cast %17 : vector<8xf32> to vector<8x1xf32>
    %19 = tpu.reciprocal %18 {approx = true} : vector<8x1xf32> -> vector<8x1xf32>
    %20 = vector.broadcast %19 : vector<8x1xf32> to vector<8x8xf32>
    %21 = arith.mulf %16, %20 : vector<8x8xf32>
    %cst_10 = arith.constant dense<0.000000e+00> : vector<8x8xf32>
    %22 = tpu.matmul %21, %10, %cst_10 {dimension_numbers = #tpu.dot_dimension_numbers<[1], [0], [0], [1], [0, 0, 1, 1], [], []>} : vector<8x8xf32>, vector<8x8xf32>, vector<8x8xf32> -> vector<8x8xf32>
    %c0_11 = arith.constant 0 : index
    %c0_12 = arith.constant 0 : index
    %23 = vector.load %arg4[%c0_11, %c0_12] : memref<32x32xf32, #tpu.memory_space<vmem>>, vector<8x32xf32>
    %cst_13 = arith.constant dense<0.000000e+00> : vector<8x32xf32>
    %24 = tpu.matmul %22, %23, %cst_13 {dimension_numbers = #tpu.dot_dimension_numbers<[1], [0], [0], [1], [0, 0, 1, 1], [], []>} : vector<8x8xf32>, vector<8x32xf32>, vector<8x32xf32> -> vector<8x32xf32>
    %25 = arith.addf %7, %24 : vector<8x32xf32>
    %26 = vector.extract_strided_slice %6 {offsets = [0, 8], sizes = [8, 8], strides = [1, 1]} : vector<8x96xf32> to vector<8x8xf32>
    %27 = vector.extract_strided_slice %6 {offsets = [0, 40], sizes = [8, 8], strides = [1, 1]} : vector<8x96xf32> to vector<8x8xf32>
    %28 = vector.extract_strided_slice %6 {offsets = [0, 72], sizes = [8, 8], strides = [1, 1]} : vector<8x96xf32> to vector<8x8xf32>
    %cst_14 = arith.constant dense<0.000000e+00> : vector<8x8xf32>
    %29 = tpu.matmul %26, %27, %cst_14 {dimension_numbers = #tpu.dot_dimension_numbers<[1], [1], [0], [0], [0, 0, 1, 0], [], []>} : vector<8x8xf32>, vector<8x8xf32>, vector<8x8xf32> -> vector<8x8xf32>
    %cst_15 = arith.constant dense<0xFF800000> : vector<8xf32>
    %30 = vector.multi_reduction <maximumf>, %29, %cst_15 [1] : vector<8x8xf32> to vector<8xf32>
    %31 = vector.shape_cast %30 : vector<8xf32> to vector<8x1xf32>
    %32 = vector.broadcast %31 : vector<8x1xf32> to vector<8x8xf32>
    %33 = arith.subf %29, %32 : vector<8x8xf32>
    %34 = math.exp %33 : vector<8x8xf32>
    %cst_16 = arith.constant dense<0.000000e+00> : vector<8xf32>
    %35 = vector.multi_reduction <add>, %34, %cst_16 [1] : vector<8x8xf32> to vector<8xf32>
    %36 = vector.shape_cast %35 : vector<8xf32> to vector<8x1xf32>
    %37 = tpu.reciprocal %36 {approx = true} : vector<8x1xf32> -> vector<8x1xf32>
    %38 = vector.broadcast %37 : vector<8x1xf32> to vector<8x8xf32>
    %39 = arith.mulf %34, %38 : vector<8x8xf32>
    %cst_17 = arith.constant dense<0.000000e+00> : vector<8x8xf32>
    %40 = tpu.matmul %39, %28, %cst_17 {dimension_numbers = #tpu.dot_dimension_numbers<[1], [0], [0], [1], [0, 0, 1, 1], [], []>} : vector<8x8xf32>, vector<8x8xf32>, vector<8x8xf32> -> vector<8x8xf32>
    %c8 = arith.constant 8 : index
    %c0_18 = arith.constant 0 : index
    %41 = vector.load %arg4[%c8, %c0_18] : memref<32x32xf32, #tpu.memory_space<vmem>>, vector<8x32xf32>
    %cst_19 = arith.constant dense<0.000000e+00> : vector<8x32xf32>
    %42 = tpu.matmul %40, %41, %cst_19 {dimension_numbers = #tpu.dot_dimension_numbers<[1], [0], [0], [1], [0, 0, 1, 1], [], []>} : vector<8x8xf32>, vector<8x32xf32>, vector<8x32xf32> -> vector<8x32xf32>
    %43 = arith.addf %25, %42 : vector<8x32xf32>
    %44 = vector.extract_strided_slice %6 {offsets = [0, 16], sizes = [8, 8], strides = [1, 1]} : vector<8x96xf32> to vector<8x8xf32>
    %45 = vector.extract_strided_slice %6 {offsets = [0, 48], sizes = [8, 8], strides = [1, 1]} : vector<8x96xf32> to vector<8x8xf32>
    %46 = vector.extract_strided_slice %6 {offsets = [0, 80], sizes = [8, 8], strides = [1, 1]} : vector<8x96xf32> to vector<8x8xf32>
    %cst_20 = arith.constant dense<0.000000e+00> : vector<8x8xf32>
    %47 = tpu.matmul %44, %45, %cst_20 {dimension_numbers = #tpu.dot_dimension_numbers<[1], [1], [0], [0], [0, 0, 1, 0], [], []>} : vector<8x8xf32>, vector<8x8xf32>, vector<8x8xf32> -> vector<8x8xf32>
    %cst_21 = arith.constant dense<0xFF800000> : vector<8xf32>
    %48 = vector.multi_reduction <maximumf>, %47, %cst_21 [1] : vector<8x8xf32> to vector<8xf32>
    %49 = vector.shape_cast %48 : vector<8xf32> to vector<8x1xf32>
    %50 = vector.broadcast %49 : vector<8x1xf32> to vector<8x8xf32>
    %51 = arith.subf %47, %50 : vector<8x8xf32>
    %52 = math.exp %51 : vector<8x8xf32>
    %cst_22 = arith.constant dense<0.000000e+00> : vector<8xf32>
    %53 = vector.multi_reduction <add>, %52, %cst_22 [1] : vector<8x8xf32> to vector<8xf32>
    %54 = vector.shape_cast %53 : vector<8xf32> to vector<8x1xf32>
    %55 = tpu.reciprocal %54 {approx = true} : vector<8x1xf32> -> vector<8x1xf32>
    %56 = vector.broadcast %55 : vector<8x1xf32> to vector<8x8xf32>
    %57 = arith.mulf %52, %56 : vector<8x8xf32>
    %cst_23 = arith.constant dense<0.000000e+00> : vector<8x8xf32>
    %58 = tpu.matmul %57, %46, %cst_23 {dimension_numbers = #tpu.dot_dimension_numbers<[1], [0], [0], [1], [0, 0, 1, 1], [], []>} : vector<8x8xf32>, vector<8x8xf32>, vector<8x8xf32> -> vector<8x8xf32>
    %c16 = arith.constant 16 : index
    %c0_24 = arith.constant 0 : index
    %59 = vector.load %arg4[%c16, %c0_24] : memref<32x32xf32, #tpu.memory_space<vmem>>, vector<8x32xf32>
    %cst_25 = arith.constant dense<0.000000e+00> : vector<8x32xf32>
    %60 = tpu.matmul %58, %59, %cst_25 {dimension_numbers = #tpu.dot_dimension_numbers<[1], [0], [0], [1], [0, 0, 1, 1], [], []>} : vector<8x8xf32>, vector<8x32xf32>, vector<8x32xf32> -> vector<8x32xf32>
    %61 = arith.addf %43, %60 : vector<8x32xf32>
    %62 = vector.extract_strided_slice %6 {offsets = [0, 24], sizes = [8, 8], strides = [1, 1]} : vector<8x96xf32> to vector<8x8xf32>
    %63 = vector.extract_strided_slice %6 {offsets = [0, 56], sizes = [8, 8], strides = [1, 1]} : vector<8x96xf32> to vector<8x8xf32>
    %64 = vector.extract_strided_slice %6 {offsets = [0, 88], sizes = [8, 8], strides = [1, 1]} : vector<8x96xf32> to vector<8x8xf32>
    %cst_26 = arith.constant dense<0.000000e+00> : vector<8x8xf32>
    %65 = tpu.matmul %62, %63, %cst_26 {dimension_numbers = #tpu.dot_dimension_numbers<[1], [1], [0], [0], [0, 0, 1, 0], [], []>} : vector<8x8xf32>, vector<8x8xf32>, vector<8x8xf32> -> vector<8x8xf32>
    %cst_27 = arith.constant dense<0xFF800000> : vector<8xf32>
    %66 = vector.multi_reduction <maximumf>, %65, %cst_27 [1] : vector<8x8xf32> to vector<8xf32>
    %67 = vector.shape_cast %66 : vector<8xf32> to vector<8x1xf32>
    %68 = vector.broadcast %67 : vector<8x1xf32> to vector<8x8xf32>
    %69 = arith.subf %65, %68 : vector<8x8xf32>
    %70 = math.exp %69 : vector<8x8xf32>
    %cst_28 = arith.constant dense<0.000000e+00> : vector<8xf32>
    %71 = vector.multi_reduction <add>, %70, %cst_28 [1] : vector<8x8xf32> to vector<8xf32>
    %72 = vector.shape_cast %71 : vector<8xf32> to vector<8x1xf32>
    %73 = tpu.reciprocal %72 {approx = true} : vector<8x1xf32> -> vector<8x1xf32>
    %74 = vector.broadcast %73 : vector<8x1xf32> to vector<8x8xf32>
    %75 = arith.mulf %70, %74 : vector<8x8xf32>
    %cst_29 = arith.constant dense<0.000000e+00> : vector<8x8xf32>
    %76 = tpu.matmul %75, %64, %cst_29 {dimension_numbers = #tpu.dot_dimension_numbers<[1], [0], [0], [1], [0, 0, 1, 1], [], []>} : vector<8x8xf32>, vector<8x8xf32>, vector<8x8xf32> -> vector<8x8xf32>
    %c24 = arith.constant 24 : index
    %c0_30 = arith.constant 0 : index
    %77 = vector.load %arg4[%c24, %c0_30] : memref<32x32xf32, #tpu.memory_space<vmem>>, vector<8x32xf32>
    %cst_31 = arith.constant dense<0.000000e+00> : vector<8x32xf32>
    %78 = tpu.matmul %76, %77, %cst_31 {dimension_numbers = #tpu.dot_dimension_numbers<[1], [0], [0], [1], [0, 0, 1, 1], [], []>} : vector<8x8xf32>, vector<8x32xf32>, vector<8x32xf32> -> vector<8x32xf32>
    %79 = arith.addf %61, %78 : vector<8x32xf32>
    %c0_32 = arith.constant 0 : index
    %c0_33 = arith.constant 0 : index
    %80 = vector.load %arg5[%c0_32, %c0_33] : memref<1x32xf32, #tpu.memory_space<vmem>>, vector<1x32xf32>
    %81 = vector.broadcast %80 : vector<1x32xf32> to vector<8x32xf32>
    %82 = arith.addf %79, %81 : vector<8x32xf32>
    %c0_34 = arith.constant 0 : index
    %c0_35 = arith.constant 0 : index
    %c0_36 = arith.constant 0 : index
    %83 = vector.load %arg6[%c0_34, %c0_35, %c0_36] : memref<1x8x32xf32, #tpu.memory_space<vmem>>, vector<1x8x32xf32>
    %84 = vector.shape_cast %83 : vector<1x8x32xf32> to vector<8x32xf32>
    %85 = vector.shape_cast %82 : vector<8x32xf32> to vector<1x8x32xf32>
    tpu.vector_store %arg6[%c0_34, %c0_35, %c0_36], %85 {strides = array<i32>} : memref<1x8x32xf32, #tpu.memory_space<vmem>>, vector<1x8x32xf32>,
    return
  }
  func.func @transform_0(%arg0: i32) -> (i32, i32, i32) {
    %c0_i32 = arith.constant 0 : i32
    %c0_i32_0 = arith.constant 0 : i32
    %c0_i32_1 = arith.constant 0 : i32
    return %arg0, %c0_i32, %c0_i32_0 : i32, i32, i32
  }
  func.func @transform_1(%arg0: i32) -> (i32, i32) {
    %c0_i32 = arith.constant 0 : i32
    %c0_i32_0 = arith.constant 0 : i32
    %c0_i32_1 = arith.constant 0 : i32
    return %c0_i32, %c0_i32_0 : i32, i32
  }
  func.func @transform_2(%arg0: i32) -> (i32, i32) {
    %c0_i32 = arith.constant 0 : i32
    %c0_i32_0 = arith.constant 0 : i32
    %c0_i32_1 = arith.constant 0 : i32
    return %c0_i32, %c0_i32_0 : i32, i32
  }
  func.func @transform_3(%arg0: i32) -> (i32, i32) {
    %c0_i32 = arith.constant 0 : i32
    %c0_i32_0 = arith.constant 0 : i32
    %c0_i32_1 = arith.constant 0 : i32
    return %c0_i32, %c0_i32_0 : i32, i32
  }
  func.func @transform_4(%arg0: i32) -> (i32, i32) {
    %c0_i32 = arith.constant 0 : i32
    %c0_i32_0 = arith.constant 0 : i32
    %c0_i32_1 = arith.constant 0 : i32
    return %c0_i32, %c0_i32_0 : i32, i32
  }
  func.func @transform_5(%arg0: i32) -> (i32, i32, i32) {
    %c0_i32 = arith.constant 0 : i32
    %c0_i32_0 = arith.constant 0 : i32
    %c0_i32_1 = arith.constant 0 : i32
    return %arg0, %c0_i32, %c0_i32_0 : i32, i32, i32
  }
}

</mosaic_0001>

<bundles_post_ra>
// kernel: tpu_custom_call.1
= control target key start
LH: loop header
LB: loop body
LE: loop exit
PB: predicated region body
PF: predicated region fallthrough
CT: control target
= control target key end

     0   :  { %10 = vsyncpa [#allocation3], 0  ;;  %s1313_s0 = inlined_call_operand.hbm [shape: f32[2,8,32], index: 0, kind: input, shape index: {}]   ;;  %s1314_s1 = inlined_call_operand.hbm [shape: f32[32,96], index: 1, kind: input, shape index: {}]   ;;  %s1315_s2 = inlined_call_operand.vmem [shape: f32[1,96], index: 2, kind: input, shape index: {}]   ;;  %s1316_s3 = inlined_call_operand.hbm [shape: f32[32,32], index: 3, kind: input, shape index: {}]   ;;  %s1317_s4 = inlined_call_operand.vmem [shape: f32[1,32], index: 4, kind: input, shape index: {}]   ;;  %s1318_s5 = inlined_call_operand.hbm [shape: f32[2,8,32], index: 5, kind: output, shape index: {}]  }
   0x1   :  { %12 = vsyncpa [#allocation3 + $0x1], 0 }
   0x2   :  { %13 = vsyncpa [#allocation6], 0 }
   0x3   :  { %14 = vsyncpa [#allocation4], 0 }
   0x4   :  { %16 = vsyncpa [#allocation4 + $0x1], 0  ;;  %s1115_s18 = smov 0   ;;  %s1117_s19 = smov 0  }
   0x5   :  { %s1119_s20 = smov 0   ;;  %s1121_s21 = smov 0  }
   0x6 LB: > { %s174_s24 = sshll.u32 %s1314_s1, 4  ;;  %s1139_s25 = sadd.s32 4294967295, %s1068_s21   ;;  %s1068_s21 = sphi %s1121_s21, %s1329_s21   ;;  %s1064_s20 = sphi %s1119_s20, %s1328_s20   ;;  %s1060_s19 = sphi %s1117_s19, %s1327_s19   ;;  %s1056_s18 = sphi %s1115_s18, %s1326_s18   ;;  %s175_s24 = int_to_ptr.hbm [resolvable:$true] %s174_s24 }
   0x7   : > { %p778_p0 = scmp.ge.s32.totalorder %s1068_s21, 1  ;;  %p43_p1 = scmp.eq.s32.totalorder %s1139_s25, 0 }
   0x8   : > { %p163_p2 = scmp.lt.s32.totalorder %s1068_s21, 3  ;;  %s1070_s27 = smov [#allocation5]  }
   0x9   : > { %s176_s28 = sshll.u32 %s1070_s27, 4  ;;  %s191_s6 = sshll.u32 %s1316_s3, 4  ;;  %s177_s28 = int_to_ptr.vmem [resolvable:$true] %s176_s28  ;;  %s192_s6 = int_to_ptr.hbm [resolvable:$true] %s191_s6 }
   0xa   : > { %p1144_p3 = pnand %p778_p0, %p163_p2  ;;  %s1071_s7 = smov [#allocation7]  }
   0xb   : > { %s193_s8 = sshll.u32 %s1071_s7, 4  ;;  %s1072_s9 = smov 128   ;;  %s194_s8 = int_to_ptr.vmem [resolvable:$true] %s193_s8 }
   0xc   : > { %p822_p4 = pneg %p1144_p3  ;;  %s1073_s10 = smov 8  }
   0xd   : > { %s777_s11 = sadd.s32 4294967294, %s1068_s21   ;;  %s1158_s12 = sadd.s32 1, %s1068_s21  }
   0xe   : > { %p823_p6 = pnand %p822_p4, %p43_p1  ;;  %s26_s13 = ssub.s32 %s1068_s21, %s1158_s12 }
   0xf   : > { %s29_s14 = sadd.s32 1, %s1064_s20  ;;  %p27_p7 = scmp.eq.s32.totalorder %s26_s13, 0 }
  0x10   : > { %825 = dma.hbm_to_vmem [thread:$0]  (!%p823_p6), %s175_s24, 512, %s177_s28, [#allocation6], %s1072_s9, %s1072_s9, %s1073_s10  }
  0x11   : > { %828 = dma.hbm_to_vmem [thread:$0]  (!%p823_p6), %s192_s6, 512, %s194_s8, [#allocation6], %s1072_s9, %s1072_s9, %s1073_s10  }
  0x12   : > { %p36_p8 = scmp.ne.s32.totalorder %s1064_s20, %s1060_s19  ;;  %p37_p9 = scmp.eq.s32.totalorder %s1068_s21, 0 }
  0x13   : > { %p42_p10 = scmp.ne.s32.totalorder %s1060_s19, %s1056_s18  ;;  %p150_p13 = scmp.eq.s32.totalorder %s1139_s25, 1 }
  0x14   : > { %s1169_s15 = scalar_select %p27_p7, %s1064_s20, %s29_s14  }
  0x15   : > { %p1171_p11 = por %p37_p9, %p36_p8  ;;  %p1177_p12 = por %p43_p1, %p42_p10 }
  0x16   : > { %p156_p0 = scmp.eq.s32.totalorder %s777_s11, 1  ;;  %p839_p2 = scmp.lt.s32.totalorder %s1068_s21, 2 }
  0x17   : > { %s210_s22 = sand.u32 1, %s1064_s20   ;;  %p1184_p4 = por %p150_p13, %p36_p8 }
  0x18   : > { %p1188_p6 = por %p156_p0, %p42_p10  ;;  %s782_s27 = sshll.u32 %s210_s22, 3 }
  0x19   : > { %s783_s28 = sshll.u32 %s1068_s21, 3  ;;  %s214_s7 = scalar_lea.vmem [#allocation2], %s782_s27 }
  0x1a   : > { %s218_s6 = scalar_lea.hbm %s1313_s0, %s783_s28  ;;  %s222_s8 = sshll.u32 %s214_s7, 4  ;;  %s223_s8 = int_to_ptr.vmem [resolvable:$true] %s222_s8 }
  0x1b   : > { %s220_s9 = sshll.u32 %s218_s6, 4  ;;  %p1198_p7 = pnand %p839_p2, %p1171_p11  ;;  %s221_s9 = int_to_ptr.hbm [resolvable:$true] %s220_s9 }
  0x1c   : > { %s211_s11 = scalar_lea.sflag [#allocation3], %s210_s22  ;;  %s968_s13 = sshra.s32 %s221_s9, 4  ;;  %s969_s13 = int_to_ptr.hbm [resolvable:$true] %s968_s13 }
  0x1d   : > { %s970_s14 = scalar_lea.hbm %s969_s13, 8  ;;  %p972_p9 = pneg %p1198_p7 }
  0x1e   : > { %p971_p8 = scmp.ne.s32.totalorder %s969_s13, %s970_s14  ;;  %s975_s29 = scalar_lea.hbm %s1313_s0, 16 }
  0x1f   : > { %p976_p11 = scmp.lt.s32.totalorder %s969_s13, %s1313_s0  ;;  %p977_p0 = scmp.lt.s32.totalorder %s975_s29, %s970_s14 }
  0x20   : > { %p973_p10 = pnand %p972_p9, %p971_p8 }
  0x21   : > { %p978_p2 = por %p977_p0, %p976_p11 }
  0x22   : > { %p974_p13 = pneg %p973_p10 }
  0x24   : > { %p979_p5 = pnand %p978_p2, %p974_p13 }
  0x26   : > { %982 = shalt.err (!%p979_p5)
}
  0x27   : > { %832 = dma.hbm_to_vmem [thread:$0]  (!%p1198_p7), %s221_s9, 128, %s223_s8, %s211_s11  }
  0x28   : > { %231 = sbr.rel (%p1144_p3) target bundleno = 1489 (0x5d1), region = 40  ;;  %s1215_s22 = sand.u32 (!%p1144_p3), 1, %s1060_s19  }
  0x29   : > { %s785_s6 = sshll.u32 (!%p1144_p3), %s1215_s22, 3  ;;  %s234_s7 = scalar_lea.sflag (!%p1144_p3), [#allocation3], %s1215_s22 }
  0x2a   : > { %s237_s13 = scalar_lea.vmem (!%p1144_p3), [#allocation2], %s785_s6 }
  0x2d   : > { %1043 = dma.done.wait (%p1177_p12), %s234_s7, 128  }
  0x2e   : > { %1045 = vsyncadd (%p1177_p12), %s234_s7, 4294967168 }
  0x2f   : > { %1047 = dma.done.wait (%p43_p1), [#allocation6], 1024  }
  0x30   : > { %1049 = vsyncadd (%p43_p1), [#allocation6], 4294966272  ;;  %v279_v0 = vld [vmem:[#allocation5 + $0x18] sm:$0xff]  ;;  %v278_v1 = vld [vmem:[#allocation5 + $0x10] sm:$0xff]  ;;  %vm284_vm0 = vcmask 261120   ;;  %s1074_s8 = smov 88  }
  0x31   : > { %300 = vmatpush.msra.mxu0 %v279_v0  ;;  %v277_v2 = vld [vmem:[#allocation5 + $0x8] sm:$0xff]  ;;  %v276_v3 = vld [vmem:[#allocation5] sm:$0xff]  ;;  %v275_v4 = vld [vmem:[%s237_s13] sm:$0xff]  ;;  %s1075_s9 = smov 96   ;;  %s1076_s10 = smov 120   ;;  %vm311_vm1 = vcmask 64512  }
  0x32   : > { %v890_v5 = vld [vmem:[%s1315_s2] ss:$0 sm:$0xff]  ;;  %s1077_s11 = smov 72   ;;  %s1078_s14 = smov 104   ;;  %v373_v8 = vld [vmem:[#allocation7] sm:$0xff]  ;;  %v439_v62 = vld [vmem:[#allocation7 + $0x8] sm:$0xff] }
  0x33   : > { %301 = vmatpush.msra.mxu0 %v278_v1  ;;  %s1079_s27 = smov 80   ;;  %s1080_s28 = smov 64   ;;  %v551_v63 = vld [vmem:[#allocation7 + $0x10] sm:$0xff] }
  0x34   : > { %s1081_s29 = smov 112   ;;  %s1082_s30 = smov 48  }
  0x35   : > { %302 = vmatpush.msra.mxu0 %v277_v2  ;;  %s1083_s16 = smov 56   ;;  %s1084_s7 = smov 40   ;;  %v641_v2 = vld [vmem:[#allocation7 + $0x18] sm:$0xff] }
  0x36   : > { %s807_s13 = sshll.u32 %s1139_s25, 3  ;;  %s673_s25 = scalar_lea.sflag [#allocation4], %s1215_s22 }
  0x37   : > { %303 = vmatpush.msra.mxu0 %v276_v3 }
  0x38   : > { %789 = vmatmul.msk.f32.vlgmr.msra.gmra.mxu0 %vm284_vm0, %v275_v4 }
  0xb5   : > { %v305_v6 = vpop.f32.mrf.mxu0 }
  0xb6   : > { %v1233_v7 = vadd.f32 %v890_v5, %v305_v6 }
  0xb8   : > { %376 = vrot.lane.b32.xlu2 %v1233_v7, %s1074_s8  ;;  %309 = vrot.lane.b32.xlu0 %v1233_v7, %s1075_s9  ;;  %s683_s8 = scalar_lea.hbm %s1318_s5, %s807_s13 }
  0xc0   : > { %374 = vrot.lane.b32.xlu2 %v1233_v7, %s1076_s10 }
  0xc8   : > { %578 = vrot.lane.b32.xlu2 %v1233_v7, %s1077_s11  ;;  %s274_s11 = scalar_lea.vmem [#allocation8], %s785_s6  ;;  %s1018_s6 = scalar_lea.hbm %s1318_s5, 16 }
  0xd0   : > { %576 = vrot.lane.b32.xlu2 %v1233_v7, %s1078_s14  ;;  %s685_s14 = sshll.u32 %s274_s11, 4  ;;  %s686_s14 = int_to_ptr.vmem [resolvable:$true] %s685_s14 }
  0xd8   : > { %488 = vrot.lane.b32.xlu2 %v1233_v7, %s1079_s27  ;;  %s687_s27 = sshll.u32 %s683_s8, 4  ;;  %s688_s27 = int_to_ptr.hbm [resolvable:$true] %s687_s27 }
 0x112   : > { %v377_v9 = vpop.permute.xlu2 %376 }
 0x113   : > { %793 = vmatpush.xpose.msk.msra.mxu3 %vm311_vm1, %v377_v9 }
 0x117   : > { %481 = vmatpush.msrb.mxu3 %v373_v8  ;;  %v891_v8 = vld [vmem:[%s1317_s4] ss:$0 sm:$0xff] }
 0x11a   : > { %v375_v10 = vpop.permute.xlu2 %374 }
 0x11b   : > { %794 = vmatmul.msk.f32.vlgmr.msra.gmra.mxu3 %vm311_vm1, %v375_v10 }
 0x122   : > { %v579_v11 = vpop.permute.xlu2 %578 }
 0x123   : > { %802 = vmatpush.xpose.msk.msra.mxu3 %vm311_vm1, %v579_v11 }
 0x12a   : > { %v577_v12 = vpop.permute.xlu2 %576  ;;  %v310_v13 = vpop.permute.xlu0 %309 }
 0x12b   : > { %790 = vmatpush.xpose.msk.msra.mxu1 %vm311_vm1, %v310_v13 }
 0x12e   : > { %791 = vmatmul.msk.f32.vlgmr.msra.gmra.mxu1 %vm311_vm1, %v1233_v7 }
 0x12f   : > { %458 = vmatpush.msrb.mxu1 %v439_v62 }
 0x131   : > { %570 = vmatpush.msra.mxu1 %v551_v63 }
 0x132   : > { %v489_v14 = vpop.permute.xlu2 %488 }
 0x133   : > { %798 = vmatpush.xpose.msk.msrb.mxu0 %vm311_vm1, %v489_v14 }
 0x19e   : > { %v399_v15 = vpop.f32.mrf.mxu3 }
 0x19f   : > { %v402_v16 = vsel %vm311_vm1, %v399_v15, -inf }
 0x1a0   : > { %403 = vmax.xlane.f32.xlu2 %v402_v16 }
 0x1ab   : > { %v333_v17 = vpop.f32.mrf.mxu1 }
 0x1ac   : > { %v336_v18 = vsel %vm311_vm1, %v333_v17, -inf }
 0x1ad   : > { %337 = vmax.xlane.f32.xlu0 %v336_v18 }
 0x213   : > { %v404_v32 = vpop.xlane.xlu2 %403 }
 0x214   : > { %v405_v33 = vsub.f32 %v399_v15, %v404_v32 }
 0x216   : > { %v406_v35 = vmul.f32 1.442695, %v405_v33 }
 0x220   : > { %v338_v19 = vpop.xlane.xlu0 %337 }
 0x221   : > { %v339_v20 = vsub.f32 %v333_v17, %v338_v19 }
 0x223   : > { %v340_v21 = vmul.f32 1.442695, %v339_v20 }
 0x225   : > { %892 = vpow2.f32 %v340_v21 }
 0x22b   : > { %v893_v22 = vpop.eup %892 }
 0x22c   : > { %v342_v23 = vsel %vm311_vm1, %v893_v22, 0.0 }
 0x22d   : > { %343 = vadd.xlane.f32.xlu1 %v342_v23 }
 0x246   : > { %347 = vrot.lane.b32.xlu1 %v1233_v7, %s1080_s28  ;;  %s1012_s28 = sshra.s32 %s688_s27, 4  ;;  %s1013_s28 = int_to_ptr.hbm [resolvable:$true] %s1012_s28 }
 0x247   : > { %p1019_p12 = scmp.lt.s32.totalorder %s1013_s28, %s1318_s5 }
 0x24e   : > { %486 = vrot.lane.b32.xlu1 %v1233_v7, %s1081_s29  ;;  %s1014_s29 = scalar_lea.hbm %s1013_s28, 8 }
 0x24f   : > { %p1015_p1 = scmp.ne.s32.totalorder %s1013_s28, %s1014_s29  ;;  %p1020_p7 = scmp.lt.s32.totalorder %s1018_s6, %s1014_s29 }
 0x251   : > { %p1016_p3 = pnand %p1015_p1, %p1184_p4  ;;  %p1021_p8 = por %p1020_p7, %p1019_p12 }
 0x253   : > { %p1017_p5 = pneg %p1016_p3 }
 0x255   : > { %p1022_p9 = pnand %p1021_p8, %p1017_p5 }
 0x2a0   : > { %v344_v24 = vpop.xlane.xlu1 %343 }
 0x2a1   : > { %894 = vrcp.f32 %v344_v24 }
 0x2a2   : > { %896 = vpow2.f32 %v406_v35 }
 0x2a7   : > { %v895_v25 = vpop.eup %894 }
 0x2a8   : > { %v346_v27 = vmul.f32 %v895_v25, %v893_v22  ;;  %v897_v41 = vpop.eup %896 }
 0x2a9   : > { %v408_v42 = vsel %vm311_vm1, %v897_v41, 0.0 }
 0x2b8   : > { %v348_v26 = vpop.permute.xlu1 %347 }
 0x2b9   : > { %368 = vmatpush.msra.mxu2 %v348_v26 }
 0x2ba   : > { %792 = vmatmul.msk.f32.vlgmr.msra.gmra.mxu2 %vm311_vm1, %v346_v27 }
 0x2c0   : > { %v487_v28 = vpop.permute.xlu1 %486 }
 0x2c1   : > { %799 = vmatmul.msk.f32.vlgmr.msrb.gmra.mxu0 %vm311_vm1, %v487_v28 }
 0x33d   : > { %v370_v29 = vpop.f32.mrf.mxu2 }
 0x33e   : > { %797 = vmatmul.msk.f32.vlgmr.msrb.gmra.mxu3 %vm311_vm1, %v370_v29  ;;  %v511_v30 = vpop.f32.mrf.mxu0 }
 0x33f   : > { %v514_v31 = vsel %vm311_vm1, %v511_v30, -inf }
 0x340   : > { %515 = vmax.xlane.f32.xlu1 %v514_v31 }
 0x346   : > { %803 = vmatmul.msk.f32.vlgmr.msra.gmra.mxu3 %vm311_vm1, %v577_v12 }
 0x359   : > { %525 = vrot.lane.b32.xlu1 %v1233_v7, %s1082_s30 }
 0x3b3   : > { %v516_v36 = vpop.xlane.xlu1 %515 }
 0x3b4   : > { %v517_v37 = vsub.f32 %v511_v30, %v516_v36 }
 0x3b6   : > { %v518_v40 = vmul.f32 1.442695, %v517_v37 }
 0x3b8   : > { %898 = vpow2.f32 %v518_v40 }
 0x3be   : > { %v899_v43 = vpop.eup %898 }
 0x3bf   : > { %v520_v44 = vsel %vm311_vm1, %v899_v43, 0.0 }
 0x3c1   : > { %v1259_v34 = vpop.f32.mrf.mxu3 }
 0x3c9   : > { %v601_v38 = vpop.f32.mrf.mxu3 }
 0x3ca   : > { %v604_v39 = vsel %vm311_vm1, %v601_v38, -inf }
 0x3cb   : > { %605 = vmax.xlane.f32.xlu0 %v604_v39  ;;  %v526_v55 = vpop.permute.xlu1 %525 }
 0x3d3   : > { %409 = vadd.xlane.f32.xlu0 %v408_v42 }
 0x3db   : > { %521 = vadd.xlane.f32.xlu0 %v520_v44 }
 0x3ef   : > { %413 = vrot.lane.b32.xlu0 %v1233_v7, %s1083_s16 }
 0x43e   : > { %v606_v45 = vpop.xlane.xlu0 %605 }
 0x43f   : > { %v607_v46 = vsub.f32 %v601_v38, %v606_v45 }
 0x441   : > { %v608_v47 = vmul.f32 1.442695, %v607_v46 }
 0x443   : > { %900 = vpow2.f32 %v608_v47 }
 0x446   : > { %v410_v50 = vpop.xlane.xlu0 %409 }
 0x447   : > { %902 = vrcp.f32 %v410_v50 }
 0x449   : > { %v901_v48 = vpop.eup %900 }
 0x44a   : > { %v610_v49 = vsel %vm311_vm1, %v901_v48, 0.0 }
 0x44b   : > { %611 = vadd.xlane.f32.xlu2 %v610_v49 }
 0x44d   : > { %v903_v52 = vpop.eup %902 }
 0x44e   : > { %v522_v51 = vpop.xlane.xlu0 %521  ;;  %v412_v54 = vmul.f32 %v903_v52, %v897_v41 }
 0x44f   : > { %904 = vrcp.f32 %v522_v51 }
 0x455   : > { %v905_v56 = vpop.eup %904 }
 0x456   : > { %v524_v57 = vmul.f32 %v905_v56, %v899_v43 }
 0x461   : > { %v414_v53 = vpop.permute.xlu0 %413 }
 0x462   : > { %434 = vmatpush.msrb.mxu2 %v414_v53 }
 0x463   : > { %615 = vrot.lane.b32.xlu2 %v1233_v7, %s1084_s7  ;;  %795 = vmatmul.msk.f32.vlgmr.msrb.gmra.mxu2 %vm311_vm1, %v412_v54 }
 0x464   : > { %546 = vmatpush.msra.mxu2 %v526_v55 }
 0x466   : > { %660 = vmatpush.msrb.mxu2 %v641_v2 }
 0x46b   : > { %800 = vmatmul.msk.f32.vlgmr.msra.gmra.mxu2 %vm311_vm1, %v524_v57 }
 0x4be   : > { %v612_v58 = vpop.xlane.xlu2 %611 }
 0x4bf   : > { %906 = vrcp.f32 %v612_v58 }
 0x4c5   : > { %v907_v59 = vpop.eup %906 }
 0x4c6   : > { %v614_v60 = vmul.f32 %v907_v59, %v901_v48  ;;  %v616_v61 = vpop.permute.xlu2 %615 }
 0x4c7   : > { %636 = vmatpush.msra.mxu0 %v616_v61 }
 0x4c8   : > { %804 = vmatmul.msk.f32.vlgmr.msra.gmra.mxu0 %vm311_vm1, %v614_v60 }
 0x4e6   : > { %v436_v0 = vpop.f32.mrf.mxu2 }
 0x4e7   : > { %796 = vmatmul.msk.f32.vlgmr.msrb.gmra.mxu1 %vm311_vm1, %v436_v0 }
 0x4ee   : > { %v548_v1 = vpop.f32.mrf.mxu2 }
 0x4ef   : > { %801 = vmatmul.msk.f32.vlgmr.msra.gmra.mxu1 %vm311_vm1, %v548_v1 }
 0x545   : > { %v638_v3 = vpop.f32.mrf.mxu0 }
 0x546   : > { %805 = vmatmul.msk.f32.vlgmr.msrb.gmra.mxu2 %vm311_vm1, %v638_v3 }
 0x564   : > { %v460_v4 = vpop.f32.mrf.mxu1 }
 0x565   : > { %v484_v6 = vadd.f32 %v1259_v34, %v460_v4 }
 0x56c   : > { %v572_v5 = vpop.f32.mrf.mxu1 }
 0x56d   : > { %v575_v7 = vadd.f32 %v572_v5, %v484_v6 }
 0x5c9   : > { %v662_v9 = vpop.f32.mrf.mxu2 }
 0x5ca   : > { %v665_v10 = vadd.f32 %v662_v9, %v575_v7 }
 0x5cc   : > { %v670_v11 = vadd.f32 %v891_v8, %v665_v10 }
 0x5ce   : > { %671 = vst.msk [vmem:[%s274_s11] sm:$0xff] %vm284_vm0, %v670_v11 }
 0x5cf   : > { %1025 = shalt.err (!%p1022_p9)
}
 0x5d0   : > { %820 = dma.vmem_to_hbm [thread:$0]  (%p1184_p4), %s686_s14, 128, %s688_s27, %s673_s25  }
 0x5d1 PF: > { %s699_s22 = sand.u32 1, %s1056_s18   ;;  %p1325_p10 = scmp.ge.s32.totalorder %s1068_s21, 2 }
 0x5d2   : > { %s700_s26 = scalar_lea.sflag [#allocation4], %s699_s22 }
 0x5d3   : > { %p834_p13 = pnand %p1325_p10, %p1188_p6 }
 0x5d5   : > { %p835_p11 = pneg %p834_p13 }
 0x5d7   : > { %1051 = dma.done.wait (%p835_p11), %s700_s26, 128  }
 0x5d8   : > { %1053 = vsyncadd (%p835_p11), %s700_s26, 4294967168  ;;  %p19_p0 = scmp.ge.s32.totalorder %s1158_s12, 4   ;;  %s1326_s18 = smov %s1060_s19 }
 0x5d9   : > { %s1327_s19 = smov %s1064_s20  ;;  %s1328_s20 = smov %s1169_s15 }
 0x5da   : > { %s1329_s21 = smov %s1158_s12  ;;  %21 = sbr.rel (!%p19_p0) target bundleno = 6 (0x6), region = 93 }
 0x5df   :  { %706 = vsyncpa [#allocation3], 1 }
 0x5e0   :  { %708 = vsyncpa [#allocation3 + $0x1], 1 }
 0x5e1   :  { %709 = vsyncpa [#allocation6], 1 }
 0x5e2   :  { %710 = vsyncpa [#allocation4], 1 }
 0x5e3   :  { %712 = vsyncpa [#allocation4 + $0x1], 1 }

</bundles_post_ra>
